<compile_context>
chip_gen: v6e
topology: v6e:2x2x1
jax: 0.10.0
libtpu: 0.0.40
codegen_flags: <defaults>
</compile_context>

<pallas_src>
import functools

import jax
import jax.numpy as jnp
from jax import lax
from jax.experimental import pallas as pl
from jax.experimental.pallas import tpu as pltpu


def _out_block_kernel(x_ref, w1_ref, b1_ref, w2_ref, b2_ref, o_ref, *, tc, n_chunks):
    # x_ref : (1, C_in, TL)     spatial tile, channels on sublanes
    # w1_ref: (hidden, C_in)    = conv1.weight[:, :, 0, 0]  (VMEM-resident)
    # b1_ref: (hidden, 1)
    # w2_ref: (C_out, hidden)   = conv2.weight[:, :, 0, 0]  (VMEM-resident)
    # b2_ref: (C_out, 1)
    # o_ref : (1, C_out, TL)    lane-dense output tile
    w1 = w1_ref[...]
    w2 = w2_ref[...]
    hidden = w1.shape[0]
    c_out = w2.shape[0]

    # Hoisted bias broadcasts: JAX does not CSE broadcast_in_dim inside loops.
    b1b = jnp.broadcast_to(b1_ref[...], (hidden, tc))
    b2b = jnp.broadcast_to(b2_ref[...], (c_out, tc))

    def body(c, carry):
        start = pl.multiple_of(c * tc, 128)
        xc = x_ref[0, :, pl.ds(start, tc)]                           # (C_in, tc)
        h = jnp.dot(w1, xc, preferred_element_type=jnp.float32)      # (hidden, tc)
        h = jnp.maximum(h + b1b, 0.0)
        y = jnp.dot(w2, h, preferred_element_type=jnp.float32) + b2b # (C_out, tc)
        o_ref[0, :, pl.ds(start, tc)] = y.astype(o_ref.dtype)
        return carry

    # Chunking the lane axis bounds the live range of h (no vreg spill on v5e).
    lax.fori_loop(0, n_chunks, body, 0, unroll=True)


def out_block_forward(x_nchw, w1, b1, w2, b2, *, tl=2048, tc=128):
    """Fused Out_Block forward.

    x_nchw: (N, C_in, H, W) float32
    w1:     (hidden=128, C_in)  -- PyTorch conv1.weight[:, :, 0, 0]
    b1:     (hidden,)
    w2:     (C_out, hidden)     -- PyTorch conv2.weight[:, :, 0, 0]
    b2:     (C_out,)
    tl:     spatial tile (lanes), sweep-able; rounded to a multiple of 128.
    tc:     in-kernel lane chunk (128-256 recommended).
    Returns (N, C_out, H, W).
    """
    N, C_in, H, W = x_nchw.shape
    hidden = w1.shape[0]
    C_out = w2.shape[0]
    HW = H * W

    # ---- spatial tile selection ------------------------------------------
    tl = max(128, (tl // 128) * 128)
    hw_128 = pl.cdiv(HW, 128) * 128            # minimal 128-lane padding target
    n128 = hw_128 // 128
    want = tl // 128
    best = 1
    for d in range(1, min(want, n128) + 1):    # largest 128-multiple tile that
        if n128 % d == 0:                      # divides hw_128 exactly
            best = d
    if best * 128 >= 512 or best == n128:
        tl = best * 128                        # pad only to next multiple of 128
        hw_pad = hw_128
    else:
        tl = want * 128                        # fallback: pad to multiple of tl
        hw_pad = pl.cdiv(HW, tl) * tl

    # v7x has 2 TensorCores: with N == 1 keep at least 2 parallel grid steps.
    if N == 1 and hw_pad == tl and hw_pad >= 256:
        n128p = hw_pad // 128
        d2 = 1
        for d in range(1, n128p // 2 + 1):
            if n128p % d == 0:
                d2 = d
        tl = d2 * 128

    # ---- in-kernel lane chunking -------------------------------------------
    tc = max(128, (tc // 128) * 128)
    tc = min(tc, tl)
    if tl % tc != 0:
        tc = 128
    n_chunks = tl // tc

    # ---- data prep (pure reshape; pad only when spatial dim is ragged) -----
    x3 = x_nchw.reshape(N, C_in, HW)
    if hw_pad != HW:
        # TODO(synk): replace with an in-kernel masked store on the last tile
        # to avoid the extra HBM pad/slice passes for ragged HW.
        x3 = jnp.pad(x3, ((0, 0), (0, 0), (0, hw_pad - HW)))

    # Biases as column vectors -> broadcast over the lane (spatial) axis.
    b1c = b1.reshape(hidden, 1)
    b2c = b2.reshape(C_out, 1)

    grid = (N, hw_pad // tl)

    # Only set an explicit VMEM limit if an unusually large tile was requested.
    vmem_est = (
        (C_in + C_out) * tl * 4 * 2                       # double-buffered x/out
        + (hidden * C_in + C_out * hidden + hidden + C_out) * 4 * 2
    )
    cp_kwargs = dict(dimension_semantics=("parallel", "parallel"))
    if vmem_est > 12 * 1024 * 1024:
        cp_kwargs["vmem_limit_bytes"] = min(int(vmem_est * 2), 96 * 1024 * 1024)

    kernel = functools.partial(_out_block_kernel, tc=tc, n_chunks=n_chunks)

    y3 = pl.pallas_call(
        kernel,
        out_shape=jax.ShapeDtypeStruct((N, C_out, hw_pad), x_nchw.dtype),
        grid_spec=pltpu.PrefetchScalarGridSpec(
            num_scalar_prefetch=0,
            grid=grid,
            in_specs=[
                pl.BlockSpec((1, C_in, tl), lambda n, j: (n, 0, j)),   # x tile
                pl.BlockSpec((hidden, C_in), lambda n, j: (0, 0)),     # W1 resident
                pl.BlockSpec((hidden, 1), lambda n, j: (0, 0)),        # b1
                pl.BlockSpec((C_out, hidden), lambda n, j: (0, 0)),    # W2 resident
                pl.BlockSpec((C_out, 1), lambda n, j: (0, 0)),         # b2
            ],
            out_specs=pl.BlockSpec((1, C_out, tl), lambda n, j: (n, 0, j)),
        ),
        compiler_params=pltpu.CompilerParams(**cp_kwargs),
    )(x3, w1, b1c, w2, b2c)

    if hw_pad != HW:
        y3 = y3[:, :, :HW]
    return y3.reshape(N, C_out, H, W)


def _reference(x, w1, b1, w2, b2):
    N, C_in, H, W = x.shape
    x3 = x.reshape(N, C_in, H * W)
    h = jnp.maximum(jnp.einsum("oc,ncs->nos", w1, x3) + b1[None, :, None], 0.0)
    y = jnp.einsum("oh,nhs->nos", w2, h) + b2[None, :, None]
    return y.reshape(N, w2.shape[0], H, W)


if __name__ == "__main__":
    # Shapes consistent with the module: N=2, C_in=4, H=W=16, C_out=4, hidden=128.
    N, C_in, H, W = 2, 4, 16, 16
    C_out, hidden = 4, 128

    key = jax.random.PRNGKey(0)
    kx, k1, k2, k3, k4, kx2 = jax.random.split(key, 6)

    x = jax.random.normal(kx, (N, C_in, H, W), dtype=jnp.float32)

    # PyTorch-style conv weights (out, in) with fan_in-uniform init.
    bound1 = 1.0 / (C_in ** 0.5)
    w1 = jax.random.uniform(k1, (hidden, C_in), jnp.float32, -bound1, bound1)
    b1 = jax.random.uniform(k2, (hidden,), jnp.float32, -bound1, bound1)
    bound2 = 1.0 / (hidden ** 0.5)
    w2 = jax.random.uniform(k3, (C_out, hidden), jnp.float32, -bound2, bound2)
    b2 = jax.random.uniform(k4, (C_out,), jnp.float32, -bound2, bound2)

    # Aligned spatial size (no padding path).
    y = jax.block_until_ready(out_block_forward(x, w1, b1, w2, b2))
    ref = _reference(x, w1, b1, w2, b2)
    assert y.shape == (N, C_out, H, W)
    assert jnp.allclose(y, ref, atol=1e-4, rtol=1e-4)

    # Ragged spatial size (exercises the 128-lane pad + slice path).
    Hr = Wr = 10
    xr = jax.random.normal(kx2, (N, C_in, Hr, Wr), dtype=jnp.float32)
    yr = jax.block_until_ready(out_block_forward(xr, w1, b1, w2, b2))
    refr = _reference(xr, w1, b1, w2, b2)
    assert yr.shape == (N, C_out, Hr, Wr)
    assert jnp.allclose(yr, refr, atol=1e-4, rtol=1e-4)

    print("KERNEL_OK")
</pallas_src>

<mosaic_0001>
module attributes {stable_mosaic.version = 11 : i64} {
  func.func @_out_block_kernel(%arg0: i32, %arg1: i32, %arg2: memref<1x4x256xf32, #tpu.memory_space<vmem>>, %arg3: memref<128x4xf32, #tpu.memory_space<vmem>>, %arg4: memref<128x1xf32, #tpu.memory_space<vmem>>, %arg5: memref<4x128xf32, #tpu.memory_space<vmem>>, %arg6: memref<4x1xf32, #tpu.memory_space<vmem>>, %arg7: memref<1x4x256xf32, #tpu.memory_space<vmem>>) attributes {dimension_semantics = [#tpu.dimension_semantics<parallel>, #tpu.dimension_semantics<parallel>], iteration_bounds = array<i64: 2, 1>, scalar_prefetch = 0 : i64, scratch_operands = 0 : i64, tpu.core_type = #tpu.core_type<tc>, window_params = [{transform_indices = @transform_0, window_bounds = array<i64: 1, 4, 256>}, {pipeline_mode = #tpu.pipeline_mode<synchronous>, transform_indices = @transform_1, window_bounds = array<i64: 128, 4>}, {pipeline_mode = #tpu.pipeline_mode<synchronous>, transform_indices = @transform_2, window_bounds = array<i64: 128, 1>}, {pipeline_mode = #tpu.pipeline_mode<synchronous>, transform_indices = @transform_3, window_bounds = array<i64: 4, 128>}, {pipeline_mode = #tpu.pipeline_mode<synchronous>, transform_indices = @transform_4, window_bounds = array<i64: 4, 1>}, {transform_indices = @transform_5, window_bounds = array<i64: 1, 4, 256>}]} {
    %c0 = arith.constant 0 : index
    %c0_0 = arith.constant 0 : index
    %0 = vector.load %arg3[%c0, %c0_0] : memref<128x4xf32, #tpu.memory_space<vmem>>, vector<128x4xf32>
    %c0_1 = arith.constant 0 : index
    %c0_2 = arith.constant 0 : index
    %1 = vector.load %arg5[%c0_1, %c0_2] : memref<4x128xf32, #tpu.memory_space<vmem>>, vector<4x128xf32>
    %c0_3 = arith.constant 0 : index
    %c0_4 = arith.constant 0 : index
    %2 = vector.load %arg4[%c0_3, %c0_4] : memref<128x1xf32, #tpu.memory_space<vmem>>, vector<128x1xf32>
    %3 = vector.shape_cast %2 : vector<128x1xf32> to vector<128x1xf32>
    %4 = vector.broadcast %3 : vector<128x1xf32> to vector<128x128xf32>
    %c0_5 = arith.constant 0 : index
    %c0_6 = arith.constant 0 : index
    %5 = vector.load %arg6[%c0_5, %c0_6] : memref<4x1xf32, #tpu.memory_space<vmem>>, vector<4x1xf32>
    %6 = vector.shape_cast %5 : vector<4x1xf32> to vector<4x1xf32>
    %7 = vector.broadcast %6 : vector<4x1xf32> to vector<4x128xf32>
    %c0_i32 = arith.constant 0 : i32
    %c128_i32 = arith.constant 128 : i32
    %8 = arith.muli %c0_i32, %c128_i32 : i32
    %9 = tpu.assume_multiple %8, 128 : i32
    %c0_7 = arith.constant 0 : index
    %c0_8 = arith.constant 0 : index
    %10 = arith.index_cast %9 : i32 to index
    %11 = vector.load %arg2[%c0_7, %c0_8, %10] : memref<1x4x256xf32, #tpu.memory_space<vmem>>, vector<1x4x128xf32>
    %12 = vector.shape_cast %11 : vector<1x4x128xf32> to vector<4x128xf32>
    %cst = arith.constant dense<0.000000e+00> : vector<128x128xf32>
    %13 = tpu.matmul %0, %12, %cst {dimension_numbers = #tpu.dot_dimension_numbers<[1], [0], [0], [1], [0, 0, 1, 1], [], []>} : vector<128x4xf32>, vector<4x128xf32>, vector<128x128xf32> -> vector<128x128xf32>
    %14 = arith.addf %13, %4 : vector<128x128xf32>
    %cst_9 = arith.constant 0.000000e+00 : f32
    %15 = vector.broadcast %cst_9 : f32 to vector<128x128xf32>
    %16 = arith.maximumf %14, %15 : vector<128x128xf32>
    %cst_10 = arith.constant dense<0.000000e+00> : vector<4x128xf32>
    %17 = tpu.matmul %1, %16, %cst_10 {dimension_numbers = #tpu.dot_dimension_numbers<[1], [0], [0], [1], [0, 0, 1, 1], [], []>} : vector<4x128xf32>, vector<128x128xf32>, vector<4x128xf32> -> vector<4x128xf32>
    %18 = arith.addf %17, %7 : vector<4x128xf32>
    %c0_11 = arith.constant 0 : index
    %c0_12 = arith.constant 0 : index
    %19 = arith.index_cast %9 : i32 to index
    %20 = vector.load %arg7[%c0_11, %c0_12, %19] : memref<1x4x256xf32, #tpu.memory_space<vmem>>, vector<1x4x128xf32>
    %21 = vector.shape_cast %20 : vector<1x4x128xf32> to vector<4x128xf32>
    %22 = vector.shape_cast %18 : vector<4x128xf32> to vector<1x4x128xf32>
    tpu.vector_store %arg7[%c0_11, %c0_12, %19], %22 {strides = array<i32>} : memref<1x4x256xf32, #tpu.memory_space<vmem>>, vector<1x4x128xf32>,
    %c1_i32 = arith.constant 1 : i32
    %c128_i32_13 = arith.constant 128 : i32
    %23 = arith.muli %c1_i32, %c128_i32_13 : i32
    %24 = tpu.assume_multiple %23, 128 : i32
    %c0_14 = arith.constant 0 : index
    %c0_15 = arith.constant 0 : index
    %25 = arith.index_cast %24 : i32 to index
    %26 = vector.load %arg2[%c0_14, %c0_15, %25] : memref<1x4x256xf32, #tpu.memory_space<vmem>>, vector<1x4x128xf32>
    %27 = vector.shape_cast %26 : vector<1x4x128xf32> to vector<4x128xf32>
    %cst_16 = arith.constant dense<0.000000e+00> : vector<128x128xf32>
    %28 = tpu.matmul %0, %27, %cst_16 {dimension_numbers = #tpu.dot_dimension_numbers<[1], [0], [0], [1], [0, 0, 1, 1], [], []>} : vector<128x4xf32>, vector<4x128xf32>, vector<128x128xf32> -> vector<128x128xf32>
    %29 = arith.addf %28, %4 : vector<128x128xf32>
    %cst_17 = arith.constant 0.000000e+00 : f32
    %30 = vector.broadcast %cst_17 : f32 to vector<128x128xf32>
    %31 = arith.maximumf %29, %30 : vector<128x128xf32>
    %cst_18 = arith.constant dense<0.000000e+00> : vector<4x128xf32>
    %32 = tpu.matmul %1, %31, %cst_18 {dimension_numbers = #tpu.dot_dimension_numbers<[1], [0], [0], [1], [0, 0, 1, 1], [], []>} : vector<4x128xf32>, vector<128x128xf32>, vector<4x128xf32> -> vector<4x128xf32>
    %33 = arith.addf %32, %7 : vector<4x128xf32>
    %c0_19 = arith.constant 0 : index
    %c0_20 = arith.constant 0 : index
    %34 = arith.index_cast %24 : i32 to index
    %35 = vector.load %arg7[%c0_19, %c0_20, %34] : memref<1x4x256xf32, #tpu.memory_space<vmem>>, vector<1x4x128xf32>
    %36 = vector.shape_cast %35 : vector<1x4x128xf32> to vector<4x128xf32>
    %37 = vector.shape_cast %33 : vector<4x128xf32> to vector<1x4x128xf32>
    tpu.vector_store %arg7[%c0_19, %c0_20, %34], %37 {strides = array<i32>} : memref<1x4x256xf32, #tpu.memory_space<vmem>>, vector<1x4x128xf32>,
    %c2_i32 = arith.constant 2 : i32
    return
  }
  func.func @transform_0(%arg0: i32, %arg1: i32) -> (i32, i32, i32) {
    %c0_i32 = arith.constant 0 : i32
    %c0_i32_0 = arith.constant 0 : i32
    return %arg0, %c0_i32, %arg1 : i32, i32, i32
  }
  func.func @transform_1(%arg0: i32, %arg1: i32) -> (i32, i32) {
    %c0_i32 = arith.constant 0 : i32
    %c0_i32_0 = arith.constant 0 : i32
    %c0_i32_1 = arith.constant 0 : i32
    return %c0_i32, %c0_i32_0 : i32, i32
  }
  func.func @transform_2(%arg0: i32, %arg1: i32) -> (i32, i32) {
    %c0_i32 = arith.constant 0 : i32
    %c0_i32_0 = arith.constant 0 : i32
    %c0_i32_1 = arith.constant 0 : i32
    return %c0_i32, %c0_i32_0 : i32, i32
  }
  func.func @transform_3(%arg0: i32, %arg1: i32) -> (i32, i32) {
    %c0_i32 = arith.constant 0 : i32
    %c0_i32_0 = arith.constant 0 : i32
    %c0_i32_1 = arith.constant 0 : i32
    return %c0_i32, %c0_i32_0 : i32, i32
  }
  func.func @transform_4(%arg0: i32, %arg1: i32) -> (i32, i32) {
    %c0_i32 = arith.constant 0 : i32
    %c0_i32_0 = arith.constant 0 : i32
    %c0_i32_1 = arith.constant 0 : i32
    return %c0_i32, %c0_i32_0 : i32, i32
  }
  func.func @transform_5(%arg0: i32, %arg1: i32) -> (i32, i32, i32) {
    %c0_i32 = arith.constant 0 : i32
    %c0_i32_0 = arith.constant 0 : i32
    return %arg0, %c0_i32, %arg1 : i32, i32, i32
  }
}

</mosaic_0001>

<bundles_post_ra>
// kernel: tpu_custom_call.1
= control target key start
LH: loop header
LB: loop body
LE: loop exit
PB: predicated region body
PF: predicated region fallthrough
CT: control target
= control target key end

     0   :  { %10 = vsyncpa [#allocation3], 0  ;;  %s1804_s0 = inlined_call_operand.vmem [shape: f32[2,4,256], index: 0, kind: input, shape index: {}]   ;;  %s1805_s1 = inlined_call_operand.vmem [shape: f32[128,4], index: 1, kind: input, shape index: {}]   ;;  %s1806_s2 = inlined_call_operand.vmem [shape: f32[128,1], index: 2, kind: input, shape index: {}]   ;;  %s1807_s3 = inlined_call_operand.vmem [shape: f32[4,128], index: 3, kind: input, shape index: {}]   ;;  %s1808_s4 = inlined_call_operand.vmem [shape: f32[4,1], index: 4, kind: input, shape index: {}]   ;;  %s1809_s5 = inlined_call_operand.hbm [shape: f32[2,4,256], index: 5, kind: output, shape index: {}]  }
   0x1   :  { %12 = vsyncpa [#allocation3 + $0x1], 0  ;;  %s1403_s18 = smov 0   ;;  %s1405_s19 = smov 0  }
   0x2   :  { %s1407_s20 = smov 0   ;;  %s1409_s21 = smov 0  }
   0x3   :  { %s1411_s22 = smov 0   ;;  %s1413_s23 = smov 0  }
   0x4 LB: > { %s990_s24 = sadd.s32 4294967295, %s1367_s23   ;;  %s991_s25 = sadd.s32 4294967294, %s1367_s23   ;;  %s1367_s23 = sphi %s1413_s23, %s18_s23   ;;  %s1363_s22 = sphi %s1411_s22, %s1816_s22   ;;  %s1359_s21 = sphi %s1409_s21, %s1815_s21   ;;  %s1355_s20 = sphi %s1407_s20, %s1814_s20   ;;  %s1351_s19 = sphi %s1405_s19, %s1813_s19   ;;  %s1347_s18 = sphi %s1403_s18, %s1812_s18  }
   0x5   : > { %s30_s26 = sadd.s32 1, %s1363_s22  ;;  %s151_s27 = sadd.s32 1, %s1355_s20 }
   0x6   : > { %p32_p0 = scmp.ge.s32.totalorder %s30_s26, 2  ;;  %p161_p1 = scmp.ne.s32.totalorder %s1355_s20, %s1351_s19 }
   0x7   : > { %p162_p2 = scmp.eq.s32.totalorder %s990_s24, 1  ;;  %p167_p3 = scmp.ne.s32.totalorder %s1351_s19, %s1347_s18 }
   0x8   : > { %s1818_s26 = smov (%p32_p0, %s30_s26), 0  ;;  %p168_p5 = scmp.eq.s32.totalorder %s991_s25, 1 }
   0x9   : > { %p1443_p4 = por %p162_p2, %p161_p1  ;;  %s146_s29 = ssub.s32 %s1363_s22, %s1818_s26 }
   0xa   : > { %p994_p6 = scmp.ge.s32.totalorder %s1367_s23, 1  ;;  %p149_p7 = scmp.eq.s32.totalorder %s146_s29, 0 }
   0xb   : > { %p1450_p8 = por %p168_p5, %p167_p3  ;;  %p211_p9 = scmp.lt.s32.totalorder %s1367_s23, 3 }
   0xc   : > { %s1456_s6 = scalar_select %p149_p7, %s1355_s20, %s151_s27  }
   0xd   : > { %p212_p10 = pnand %p994_p6, %p211_p9 }
   0xe   : > { %p244_p11 = scmp.lt.s32.totalorder (!%p212_p10), %s1359_s21, 1  ;;  %s240_s27 = sand.u32 (!%p212_p10), 1, %s1351_s19  }
   0xf   : > { %215 = sbr.rel (%p212_p10) target bundleno = 523 (0x20b), region = 40  ;;  %s995_s29 = sshll.u32 (!%p212_p10), %s240_s27, 3 }
  0x10   : > { %s242_s7 = scalar_lea.vmem (!%p212_p10), [#allocation2], %s995_s29  ;;  %s1040_s8 = sshll.u32 (!%p212_p10), %s1359_s21, 7 }
  0x11   : > { %s1764_s12 = scalar_lea.hbm (!%p212_p10), %s1809_s5, %s1040_s8  ;;  %s1372_s15 = smov (!%p212_p10), [#allocation2]  }
  0x12   : > { %s1295_s16 = sshll.u32 (!%p212_p10), %s1372_s15, 4  ;;  %s1296_s16 = int_to_ptr.vmem [resolvable:$false] %s1295_s16 }
  0x14   : > { %v1462_v0 = vld [vmem:[%s1805_s1] sm:$0xff]  ;;  %vm374_vm0 = vcmask 31744   ;;  %s245_s9 = scalar_select %p244_p11, %s1359_s21, 1  ;;  %v1369_v1 = vmov 0   ;;  %vm423_vm1 = vcmask 1043456   ;;  %v286_v2 = vld [vmem:[%s1806_s2 + $0x78] sm:$0xff] }
  0x15   : > { %1111 = vmatprep.mubr.msk.f32.mxu0 %vm374_vm0, %v1462_v0  ;;  %1289 = vset.pattern.permute.xlu0 %v1369_v1  ;;  %v284_v3 = vld [vmem:[%s1806_s2 + $0x68] sm:$0xff]  ;;  %v1485_v7 = vld [vmem:[%s1805_s1 + $0x10] sm:$0xff]  ;;  %v283_v9 = vld [vmem:[%s1806_s2 + $0x60] sm:$0xff]  ;;  %v1370_v36 = vmov 0.0   ;;  %vm1371_vm2 = vmmov 0   ;;  %s1297_s21 = scalar_lea.vmem %s1296_s16, 256 }
  0x16   : > { %1290 = vset.pattern.permute.xlu1 %v1369_v1  ;;  %s1039_s10 = sshll.u32 %s245_s9, 3  ;;  %v1479_v6 = vld [vmem:[%s1805_s1 + $0x8] sm:$0xff]  ;;  %364 = vperm.xlu0 %1289, %v286_v2   ;;  %v285_v8 = vld [vmem:[%s1806_s2 + $0x70] sm:$0xff]  ;;  %v257_v10 = vld [vmem:[%s1805_s1 + $0x18] sm:$0xff]  ;;  %s914_s9 = sshll.u32 %s242_s7, 4  ;;  %s915_s9 = int_to_ptr.vmem [resolvable:$true] %s914_s9 }
  0x17   : > { %s251_s13 = scalar_lea.vmem %s1804_s0, %s1039_s10  ;;  %354 = vperm.xlu1 %1290, %v284_v3   ;;  %v258_v11 = vld [vmem:[%s1805_s1 + $0x20] sm:$0xff]  ;;  %v282_v12 = vld [vmem:[%s1806_s2 + $0x58] sm:$0xff]  ;;  %v281_v13 = vld [vmem:[%s1806_s2 + $0x50] sm:$0xff]  ;;  %1135 = vmatprep.subr.mxu1 %v1370_v36  ;;  %s1291_s14 = scalar_lea.vmem %s915_s9, 128 }
  0x18   : > { %v373_v4 = vld [vmem:[%s251_s13] sm:$0xf]  ;;  %v1015_v5 = vld [vmem:[%s251_s13 + $0x4] sm:$0xf]  ;;  %v259_v14 = vld [vmem:[%s1805_s1 + $0x28] sm:$0xff]  ;;  %1167 = vmatprep.mubr.msk.f32.mxu1 %vm1371_vm2, %v1370_v36  ;;  %s898_s13 = scalar_lea.sflag [#allocation3], %s240_s27  ;;  %p1292_p12 = scmp.ne.s32.totalorder %s915_s9, %s1291_s14 }
  0x19   : > { %1109 = vmatprep.subr.msk.mxu0 %vm423_vm1, %v373_v4  ;;  %v260_v15 = vld [vmem:[%s1805_s1 + $0x30] sm:$0xff]  ;;  %v280_v16 = vld [vmem:[%s1806_s2 + $0x48] sm:$0xff]  ;;  %v279_v17 = vld [vmem:[%s1806_s2 + $0x40] sm:$0xff]  ;;  %p1298_p1 = scmp.lt.s32.totalorder %s915_s9, %s1296_s16  ;;  %p1299_p2 = scmp.lt.s32.totalorder %s1297_s21, %s1291_s14 }
  0x1a   : > { %1110 = vmatpush3.msk.msra.mxu0 %vm423_vm1, %v373_v4  ;;  %359 = vperm.xlu0 %1289, %v285_v8   ;;  %v261_v18 = vld [vmem:[%s1805_s1 + $0x38] sm:$0xff]  ;;  %v262_v19 = vld [vmem:[%s1805_s1 + $0x40] sm:$0xff]  ;;  %v277_v21 = vld [vmem:[%s1806_s2 + $0x30] sm:$0xff]  ;;  %p1293_p13 = pnand %p1292_p12, %p1443_p4 }
  0x1b   : > { %1112 = vmatmul.mubr.msk.f32.vlgmr.msra.gmra.mxu0 %vm374_vm0, %v1479_v6  ;;  %1170 = vmatprep.subr.msk.mxu0 %vm423_vm1, %v1015_v5  ;;  %v278_v20 = vld [vmem:[%s1806_s2 + $0x38] sm:$0xff]  ;;  %v263_v22 = vld [vmem:[%s1805_s1 + $0x48] sm:$0xff]  ;;  %v264_v23 = vld [vmem:[%s1805_s1 + $0x50] sm:$0xff]  ;;  %p1300_p3 = por %p1299_p2, %p1298_p1 }
  0x1c   : > { %1171 = vmatpush3.msk.msra.mxu0 %vm423_vm1, %v1015_v5  ;;  %1114 = vmatprep.mubr.msk.f32.mxu0 %vm374_vm0, %v1485_v7  ;;  %v276_v24 = vld [vmem:[%s1806_s2 + $0x28] sm:$0xff]  ;;  %v275_v25 = vld [vmem:[%s1806_s2 + $0x20] sm:$0xff]  ;;  %v265_v26 = vld [vmem:[%s1805_s1 + $0x58] sm:$0xff]  ;;  %p1294_p0 = pneg %p1293_p13 }
  0x1d   : > { %349 = vperm.xlu1 %1290, %v283_v9   ;;  %v266_v27 = vld [vmem:[%s1805_s1 + $0x60] sm:$0xff]  ;;  %v274_v28 = vld [vmem:[%s1806_s2 + $0x18] sm:$0xff]  ;;  %v273_v29 = vld [vmem:[%s1806_s2 + $0x10] sm:$0xff] }
  0x1e   : > { %344 = vperm.xlu0 %1289, %v282_v12   ;;  %v267_v30 = vld [vmem:[%s1805_s1 + $0x68] sm:$0xff]  ;;  %v268_v31 = vld [vmem:[%s1805_s1 + $0x70] sm:$0xff]  ;;  %v271_v33 = vld [vmem:[%s1806_s2] sm:$0xff]  ;;  %p1301_p5 = pnand %p1300_p3, %p1294_p0 }
  0x1f   : > { %1115 = vmatmul.mubr.msk.f32.gmra.mxu0 %vm374_vm0, %v257_v10  ;;  %v272_v32 = vld [vmem:[%s1806_s2 + $0x8] sm:$0xff]  ;;  %v269_v34 = vld [vmem:[%s1805_s1 + $0x78] sm:$0xff]  ;;  %v367_v35 = vld [vmem:[%s1808_s4] sm:$0xf] }
  0x20   : > { %1117 = vmatprep.mubr.msk.f32.mxu0 %vm374_vm0, %v258_v11 }
  0x21   : > { %339 = vperm.xlu1 %1290, %v281_v13  }
  0x22   : > { %334 = vperm.xlu0 %1289, %v280_v16  }
  0x23   : > { %1118 = vmatmul.mubr.msk.f32.gmra.mxu0 %vm374_vm0, %v259_v14 }
  0x24   : > { %1120 = vmatprep.mubr.msk.f32.mxu0 %vm374_vm0, %v260_v15 }
  0x25   : > { %329 = vperm.xlu1 %1290, %v279_v17  }
  0x26   : > { %324 = vperm.xlu0 %1289, %v278_v20  }
  0x27   : > { %1121 = vmatmul.mubr.msk.f32.gmra.mxu0 %vm374_vm0, %v261_v18 }
  0x28   : > { %1123 = vmatprep.mubr.msk.f32.mxu0 %vm374_vm0, %v262_v19 }
  0x29   : > { %319 = vperm.xlu1 %1290, %v277_v21  }
  0x2a   : > { %314 = vperm.xlu0 %1289, %v276_v24  }
  0x2b   : > { %1124 = vmatmul.mubr.msk.f32.gmra.mxu0 %vm374_vm0, %v263_v22 }
  0x2c   : > { %1126 = vmatprep.mubr.msk.f32.mxu0 %vm374_vm0, %v264_v23 }
  0x2d   : > { %309 = vperm.xlu1 %1290, %v275_v25  }
  0x2e   : > { %304 = vperm.xlu0 %1289, %v274_v28  }
  0x2f   : > { %1127 = vmatmul.mubr.msk.f32.gmra.mxu0 %vm374_vm0, %v265_v26 }
  0x30   : > { %1129 = vmatprep.mubr.msk.f32.mxu0 %vm374_vm0, %v266_v27 }
  0x31   : > { %299 = vperm.xlu1 %1290, %v273_v29  }
  0x32   : > { %294 = vperm.xlu0 %1289, %v272_v32  }
  0x33   : > { %1130 = vmatmul.mubr.msk.f32.gmra.mxu0 %vm374_vm0, %v267_v30 }
  0x34   : > { %1132 = vmatprep.mubr.msk.f32.mxu0 %vm374_vm0, %v268_v31 }
  0x35   : > { %289 = vperm.xlu1 %1290, %v271_v33  }
  0x36   : > { %370 = vperm.xlu0 %1289, %v367_v35  }
  0x37   : > { %1133 = vmatmul.mubr.msk.f32.gmra.mxu0 %vm374_vm0, %v269_v34 }
  0x38   : > { %1172 = vmatprep.mubr.msk.f32.mxu0 %vm374_vm0, %v1462_v0 }
  0x3b   : > { %1173 = vmatmul.mubr.msk.f32.vlgmr.msra.gmra.mxu0 %vm374_vm0, %v1479_v6 }
  0x3c   : > { %1175 = vmatprep.mubr.msk.f32.mxu0 %vm374_vm0, %v1485_v7 }
  0x3f   : > { %1176 = vmatmul.mubr.msk.f32.gmra.mxu0 %vm374_vm0, %v257_v10 }
  0x40   : > { %1178 = vmatprep.mubr.msk.f32.mxu0 %vm374_vm0, %v258_v11 }
  0x43   : > { %1179 = vmatmul.mubr.msk.f32.gmra.mxu0 %vm374_vm0, %v259_v14 }
  0x44   : > { %1181 = vmatprep.mubr.msk.f32.mxu0 %vm374_vm0, %v260_v15 }
  0x47   : > { %1182 = vmatmul.mubr.msk.f32.gmra.mxu0 %vm374_vm0, %v261_v18 }
  0x48   : > { %1184 = vmatprep.mubr.msk.f32.mxu0 %vm374_vm0, %v262_v19 }
  0x4b   : > { %1185 = vmatmul.mubr.msk.f32.gmra.mxu0 %vm374_vm0, %v263_v22 }
  0x4c   : > { %1187 = vmatprep.mubr.msk.f32.mxu0 %vm374_vm0, %v264_v23 }
  0x4f   : > { %1188 = vmatmul.mubr.msk.f32.gmra.mxu0 %vm374_vm0, %v265_v26 }
  0x50   : > { %1190 = vmatprep.mubr.msk.f32.mxu0 %vm374_vm0, %v266_v27 }
  0x53   : > { %1191 = vmatmul.mubr.msk.f32.gmra.mxu0 %vm374_vm0, %v267_v30 }
  0x54   : > { %1193 = vmatprep.mubr.msk.f32.mxu0 %vm374_vm0, %v268_v31 }
  0x57   : > { %1194 = vmatmul.mubr.msk.f32.gmra.mxu0 %vm374_vm0, %v269_v34 }
  0x91   : > { %v1623_v42 = vpop.permute.xlu0 %364 }
  0x92   : > { %v1627_v44 = vpop.permute.xlu1 %354 }
  0x95   : > { %v1629_v47 = vpop.permute.xlu0 %359 }
  0x98   : > { %v1631_v49 = vpop.permute.xlu1 %349 }
  0x99   : > { %v1633_v52 = vpop.permute.xlu0 %344 }
  0x9c   : > { %v1635_v54 = vpop.permute.xlu1 %339 }
  0x9d   : > { %v1637_v57 = vpop.permute.xlu0 %334 }
  0xa0   : > { %v1640_v60 = vpop.permute.xlu1 %329 }
  0xa1   : > { %v1647_v4 = vpop.permute.xlu0 %324 }
  0xa4   : > { %v1653_v8 = vpop.permute.xlu1 %319 }
  0xa5   : > { %v1663_v15 = vpop.permute.xlu0 %314 }
  0xa8   : > { %v1669_v19 = vpop.permute.xlu1 %309 }
  0xa9   : > { %v1679_v26 = vpop.permute.xlu0 %304 }
  0xac   : > { %v1686_v30 = vpop.permute.xlu1 %299 }
  0xdb   : > { %v1613_v37 = vpop.f32.mrf.mxu0 }
  0xdd   : > { %v1615_v38 = vpop.f32.mrf.mxu0 }
  0xdf   : > { %v1617_v39 = vpop.f32.mrf.mxu0 }
  0xe0   : > { %v509_v35 = vadd.f32 %v1617_v39, %v1679_v26 }
  0xe1   : > { %v1619_v40 = vpop.f32.mrf.mxu0 }
  0xe3   : > { %v1621_v41 = vpop.f32.mrf.mxu0 }
  0xe4   : > { %v519_v28 = vadd.f32 %v1621_v41, %v1663_v15  ;;  %v1694_v41 = vpop.permute.xlu0 %294 }
  0xe5   : > { %v1625_v43 = vpop.f32.mrf.mxu0  ;;  %v499_v39 = vadd.f32 %v1613_v37, %v1694_v41 }
  0xe6   : > { %v514_v32 = vadd.f32 %v1625_v43, %v1669_v19  ;;  %v1699_v43 = vpop.permute.xlu1 %289 }
  0xe7   : > { %v1122_v45 = vpop.f32.mrf.mxu0 }
  0xe8   : > { %v529_v21 = vadd.f32 %v1122_v45, %v1647_v4  ;;  %v577_v45 = vmax.f32 %v519_v28, 0.0 }
  0xe9   : > { %v523_v46 = vpop.f32.mrf.mxu0 }
  0xea   : > { %v524_v24 = vadd.f32 %v523_v46, %v1653_v8  ;;  %v579_v29 = vmax.f32 %v529_v21, 0.0 }
  0xeb   : > { %v1125_v48 = vpop.f32.mrf.mxu0 }
  0xec   : > { %v539_v13 = vadd.f32 %v1125_v48, %v1637_v57  ;;  %v578_v33 = vmax.f32 %v524_v24, 0.0  ;;  %v504_v48 = vadd.f32 %v1619_v40, %v1686_v30 }
  0xed   : > { %v533_v50 = vpop.f32.mrf.mxu0 }
  0xee   : > { %v534_v17 = vadd.f32 %v533_v50, %v1640_v60  ;;  %v581_v22 = vmax.f32 %v539_v13, 0.0  ;;  %v576_v50 = vmax.f32 %v514_v32, 0.0 }
  0xef   : > { %v1128_v51 = vpop.f32.mrf.mxu0 }
  0xf0   : > { %v549_v6 = vadd.f32 %v1128_v51, %v1633_v52  ;;  %v580_v25 = vmax.f32 %v534_v17, 0.0 }
  0xf1   : > { %v543_v53 = vpop.f32.mrf.mxu0 }
  0xf2   : > { %v544_v10 = vadd.f32 %v543_v53, %v1635_v54  ;;  %v583_v14 = vmax.f32 %v549_v6, 0.0  ;;  %v575_v53 = vmax.f32 %v509_v35, 0.0 }
  0xf3   : > { %v1131_v55 = vpop.f32.mrf.mxu0 }
  0xf4   : > { %v559_v62 = vadd.f32 %v1131_v55, %v1627_v44  ;;  %v582_v18 = vmax.f32 %v544_v10, 0.0 }
  0xf5   : > { %v553_v56 = vpop.f32.mrf.mxu0 }
  0xf6   : > { %v554_v2 = vadd.f32 %v553_v56, %v1631_v49  ;;  %v585_v7 = vmax.f32 %v559_v62, 0.0  ;;  %v494_v56 = vadd.f32 %v1615_v38, %v1699_v43 }
  0xf7   : > { %v1134_v58 = vpop.f32.mrf.mxu0 }
  0xf8   : > { %v569_v59 = vadd.f32 %v1134_v58, %v1623_v42  ;;  %v584_v11 = vmax.f32 %v554_v2, 0.0  ;;  %v574_v58 = vmax.f32 %v504_v48, 0.0  ;;  %v572_v62 = vmax.f32 %v494_v56, 0.0 }
  0xf9   : > { %v563_v61 = vpop.f32.mrf.mxu0 }
  0xfa   : > { %v587_v63 = vmax.f32 %v569_v59, 0.0  ;;  %v564_v0 = vadd.f32 %v563_v61, %v1629_v47  ;;  %v573_v59 = vmax.f32 %v499_v39, 0.0 }
  0xfb   : > { %v1644_v1 = vpop.f32.mrf.mxu0 }
  0xfc   : > { %v586_v3 = vmax.f32 %v564_v0, 0.0  ;;  %1136 = vmatpush3.msra.mxu1 %v587_v63  ;;  %v1713_v63 = vld [vmem:[%s1807_s3] sm:$0xf] }
  0xfd   : > { %1137 = vmatprep.subr.mxu1 %v1370_v36  ;;  %v1650_v5 = vpop.f32.mrf.mxu0 }
  0xfe   : > { %1138 = vmatpush3.msra.mxu1 %v586_v3 }
  0xff   : > { %1139 = vmatprep.subr.mxu1 %v1370_v36  ;;  %v1656_v9 = vpop.f32.mrf.mxu0 }
 0x100   : > { %1140 = vmatpush3.msra.mxu1 %v585_v7 }
 0x101   : > { %1141 = vmatprep.subr.mxu1 %v1370_v36  ;;  %v1660_v12 = vpop.f32.mrf.mxu0 }
 0x102   : > { %1142 = vmatpush3.msra.mxu1 %v584_v11 }
 0x103   : > { %1143 = vmatprep.subr.mxu1 %v1370_v36  ;;  %v1666_v16 = vpop.f32.mrf.mxu0 }
 0x104   : > { %1144 = vmatpush3.msra.mxu1 %v583_v14 }
 0x105   : > { %1145 = vmatprep.subr.mxu1 %v1370_v36  ;;  %v1672_v20 = vpop.f32.mrf.mxu0 }
 0x106   : > { %1146 = vmatpush3.msra.mxu1 %v582_v18 }
 0x107   : > { %1147 = vmatprep.subr.mxu1 %v1370_v36  ;;  %v1676_v23 = vpop.f32.mrf.mxu0 }
 0x108   : > { %1148 = vmatpush3.msra.mxu1 %v581_v22 }
 0x109   : > { %1149 = vmatprep.subr.mxu1 %v1370_v36  ;;  %v1682_v27 = vpop.f32.mrf.mxu0 }
 0x10a   : > { %1150 = vmatpush3.msra.mxu1 %v580_v25 }
 0x10b   : > { %1151 = vmatprep.subr.mxu1 %v1370_v36  ;;  %v1186_v31 = vpop.f32.mrf.mxu0 }
 0x10c   : > { %1152 = vmatpush3.msra.mxu1 %v579_v29 }
 0x10d   : > { %1153 = vmatprep.subr.mxu1 %v1370_v36  ;;  %v770_v34 = vpop.f32.mrf.mxu0 }
 0x10e   : > { %1154 = vmatpush3.msra.mxu1 %v578_v33  ;;  %v771_v13 = vadd.f32 %v770_v34, %v1640_v60  ;;  %v756_v60 = vadd.f32 %v1666_v16, %v1663_v15  ;;  %v741_v15 = vadd.f32 %v1660_v12, %v1686_v30 }
 0x10f   : > { %1155 = vmatprep.subr.mxu1 %v1370_v36  ;;  %v1189_v46 = vpop.f32.mrf.mxu0 }
 0x110   : > { %1156 = vmatpush3.msra.mxu1 %v577_v45  ;;  %v786_v7 = vadd.f32 %v1189_v46, %v1633_v52  ;;  %v766_v52 = vadd.f32 %v1676_v23, %v1647_v4  ;;  %v817_v17 = vmax.f32 %v771_v13, 0.0  ;;  %v751_v4 = vadd.f32 %v1672_v20, %v1669_v19 }
 0x111   : > { %1157 = vmatprep.subr.mxu1 %v1370_v36  ;;  %v780_v51 = vpop.f32.mrf.mxu0  ;;  %v814_v22 = vmax.f32 %v756_v60, 0.0  ;;  %v736_v19 = vadd.f32 %v1644_v1, %v1694_v41  ;;  %v811_v23 = vmax.f32 %v741_v15, 0.0  ;;  %v371_v1 = vpop.permute.xlu0 %370 }
 0x112   : > { %1158 = vmatpush3.msra.mxu1 %v576_v50  ;;  %v820_v11 = vmax.f32 %v786_v7, 0.0  ;;  %v816_v18 = vmax.f32 %v766_v52, 0.0  ;;  %v813_v16 = vmax.f32 %v751_v4, 0.0 }
 0x113   : > { %1159 = vmatprep.subr.mxu1 %v1370_v36  ;;  %v1192_v55 = vpop.f32.mrf.mxu0  ;;  %v810_v12 = vmax.f32 %v736_v19, 0.0 }
 0x114   : > { %1160 = vmatpush3.msra.mxu1 %v575_v53  ;;  %v796_v0 = vadd.f32 %v1192_v55, %v1627_v44 }
 0x115   : > { %1161 = vmatprep.subr.mxu1 %v1370_v36  ;;  %v790_v40 = vpop.f32.mrf.mxu0 }
 0x116   : > { %1162 = vmatpush3.msra.mxu1 %v574_v58  ;;  %v822_v44 = vmax.f32 %v796_v0, 0.0 }
 0x117   : > { %1163 = vmatprep.subr.mxu1 %v1370_v36  ;;  %v1195_v61 = vpop.f32.mrf.mxu0 }
 0x118   : > { %v806_v37 = vadd.f32 %v1195_v61, %v1623_v42  ;;  %1164 = vmatpush3.msra.mxu1 %v573_v59  ;;  %v791_v42 = vadd.f32 %v790_v40, %v1631_v49  ;;  %v776_v49 = vadd.f32 %v1186_v31, %v1637_v57  ;;  %v761_v57 = vadd.f32 %v1682_v27, %v1653_v8 }
 0x119   : > { %1165 = vmatprep.subr.mxu1 %v1370_v36  ;;  %v800_v38 = vpop.f32.mrf.mxu0  ;;  %v746_v8 = vadd.f32 %v1656_v9, %v1679_v26  ;;  %v731_v9 = vadd.f32 %v1650_v5, %v1699_v43 }
 0x11a   : > { %v824_v2 = vmax.f32 %v806_v37, 0.0  ;;  %v801_v3 = vadd.f32 %v800_v38, %v1629_v47  ;;  %1166 = vmatpush3.msra.mxu1 %v572_v62  ;;  %v781_v47 = vadd.f32 %v780_v51, %v1635_v54  ;;  %v821_v10 = vmax.f32 %v791_v42, 0.0 }
 0x11b   : > { %1168 = vmatmul.mubr.f32.vlgmr.msra.gmra.mxu1 %v1713_v63  ;;  %1196 = vmatprep.subr.mxu1 %v1370_v36  ;;  %v818_v54 = vmax.f32 %v776_v49, 0.0  ;;  %v815_v21 = vmax.f32 %v761_v57, 0.0  ;;  %v812_v20 = vmax.f32 %v746_v8, 0.0  ;;  %v809_v24 = vmax.f32 %v731_v9, 0.0 }
 0x11c   : > { %v823_v6 = vmax.f32 %v801_v3, 0.0  ;;  %1197 = vmatpush3.msra.mxu1 %v824_v2  ;;  %1228 = vmatprep.mubr.msk.f32.mxu1 %vm1371_vm2, %v1370_v36  ;;  %v819_v14 = vmax.f32 %v781_v47, 0.0 }
 0x11d   : > { %1198 = vmatprep.subr.mxu1 %v1370_v36 }
 0x11e   : > { %1199 = vmatpush3.msra.mxu1 %v823_v6 }
 0x11f   : > { %1200 = vmatprep.subr.mxu1 %v1370_v36 }
 0x120   : > { %1201 = vmatpush3.msra.mxu1 %v822_v44 }
 0x121   : > { %1202 = vmatprep.subr.mxu1 %v1370_v36 }
 0x122   : > { %1203 = vmatpush3.msra.mxu1 %v821_v10 }
 0x123   : > { %1204 = vmatprep.subr.mxu1 %v1370_v36 }
 0x124   : > { %1205 = vmatpush3.msra.mxu1 %v820_v11 }
 0x125   : > { %1206 = vmatprep.subr.mxu1 %v1370_v36 }
 0x126   : > { %1207 = vmatpush3.msra.mxu1 %v819_v14 }
 0x127   : > { %1208 = vmatprep.subr.mxu1 %v1370_v36 }
 0x128   : > { %1209 = vmatpush3.msra.mxu1 %v818_v54 }
 0x129   : > { %1210 = vmatprep.subr.mxu1 %v1370_v36 }
 0x12a   : > { %1211 = vmatpush3.msra.mxu1 %v817_v17 }
 0x12b   : > { %1212 = vmatprep.subr.mxu1 %v1370_v36 }
 0x12c   : > { %1213 = vmatpush3.msra.mxu1 %v816_v18 }
 0x12d   : > { %1214 = vmatprep.subr.mxu1 %v1370_v36 }
 0x12e   : > { %1215 = vmatpush3.msra.mxu1 %v815_v21 }
 0x12f   : > { %1216 = vmatprep.subr.mxu1 %v1370_v36 }
 0x130   : > { %1217 = vmatpush3.msra.mxu1 %v814_v22 }
 0x131   : > { %1218 = vmatprep.subr.mxu1 %v1370_v36 }
 0x132   : > { %1219 = vmatpush3.msra.mxu1 %v813_v16 }
 0x133   : > { %1220 = vmatprep.subr.mxu1 %v1370_v36 }
 0x134   : > { %1221 = vmatpush3.msra.mxu1 %v812_v20 }
 0x135   : > { %1222 = vmatprep.subr.mxu1 %v1370_v36 }
 0x136   : > { %1223 = vmatpush3.msra.mxu1 %v811_v23 }
 0x137   : > { %1224 = vmatprep.subr.mxu1 %v1370_v36 }
 0x138   : > { %1225 = vmatpush3.msra.mxu1 %v810_v12 }
 0x139   : > { %1226 = vmatprep.subr.mxu1 %v1370_v36 }
 0x13a   : > { %1227 = vmatpush3.msra.mxu1 %v809_v24 }
 0x13b   : > { %1229 = vmatmul.mubr.f32.vlgmr.msra.gmra.mxu1 %v1713_v63 }
 0x1db   : > { %v654_v5 = vpop.f32.mrf.mxu1 }
 0x1dc   : > { %v655_v25 = vadd.f32 %v654_v5, %v371_v1 }
 0x1dd   : > { %v1169_v26 = vpop.f32.mrf.mxu1 }
 0x1de   : > { %658 = vst [vmem:[%s242_s7] sm:$0xf] %v655_v25 }
 0x1fb   : > { %v891_v27 = vpop.f32.mrf.mxu1 }
 0x1fc   : > { %v892_v28 = vadd.f32 %v891_v27, %v371_v1 }
 0x1fd   : > { %v1230_v36 = vpop.f32.mrf.mxu1 }
 0x1fe   : > { %1033 = vst [vmem:[%s242_s7 + $0x4] sm:$0xf] %v892_v28 }
 0x1ff   : > { %1304 = shalt.err (!%p1301_p5)
}
 0x200   : > { %s1305_s17 = scalar_lea.hbm %s1764_s12, 128  ;;  %s1309_s27 = scalar_lea.hbm %s1809_s5, 256 }
 0x201   : > { %p1306_p6 = scmp.ne.s32.totalorder %s1764_s12, %s1305_s17  ;;  %p1310_p10 = scmp.lt.s32.totalorder %s1764_s12, %s1809_s5 }
 0x202   : > { %p1311_p11 = scmp.lt.s32.totalorder %s1309_s27, %s1305_s17 }
 0x203   : > { %p1307_p7 = pnand %p1306_p6, %p1443_p4 }
 0x204   : > { %p1312_p12 = por %p1311_p11, %p1310_p10 }
 0x205   : > { %p1308_p9 = pneg %p1307_p7 }
 0x207   : > { %p1313_p13 = pnand %p1312_p12, %p1308_p9 }
 0x209   : > { %1316 = shalt.err (!%p1313_p13)
}
 0x20a   : > { %1231 = dma.vmem_to_hbm [thread:$0]  (%p1443_p4), %s915_s9, 128, %s1764_s12, %s898_s13  }
 0x20b PF: > { %p1237_p0 = scmp.ge.s32.totalorder %s1367_s23, 2  ;;  %s926_s8 = sand.u32 1, %s1347_s18  }
 0x20c   : > { %s927_s10 = scalar_lea.sflag [#allocation3], %s926_s8 }
 0x20d   : > { %p1234_p1 = pnand %p1237_p0, %p1450_p8 }
 0x20f   : > { %p1235_p2 = pneg %p1234_p1 }
 0x211   : > { %1342 = dma.done.wait (%p1235_p2), %s927_s10, 128  }
 0x212   : > { %1344 = vsyncadd (%p1235_p2), %s927_s10, 4294967168  ;;  %s18_s23 = sadd.s32 1, %s1367_s23   ;;  %s1812_s18 = smov %s1351_s19 }
 0x213   : > { %p15_p3 = scmp.ge.s32.totalorder %s18_s23, 4   ;;  %s1813_s19 = smov %s1355_s20 }
 0x214   : > { %s1814_s20 = smov %s1456_s6  ;;  %s1815_s21 = smov %s1363_s22 }
 0x215   : > { %s1816_s22 = smov %s1818_s26  ;;  %17 = sbr.rel (!%p15_p3) target bundleno = 4 (0x4), region = 77 }
 0x21a   :  { %932 = vsyncpa [#allocation3], 1 }
 0x21b   :  { %934 = vsyncpa [#allocation3 + $0x1], 1 }

</bundles_post_ra>
